<compile_context>
chip_gen: v7x
topology: tpu7x:2x2x1
jax: 0.10.0
libtpu: 0.0.40
codegen_flags: <defaults>
</compile_context>

<pallas_src>
import functools
import math

import jax
import jax.numpy as jnp
from jax.experimental import pallas as pl
from jax.experimental.pallas import tpu as pltpu


# ---------------------------------------------------------------------------
# Hardware / budget helpers
# ---------------------------------------------------------------------------
def _vmem_capacity_bytes():
    try:
        return int(pltpu.get_tpu_info().vmem_capacity_bytes)
    except Exception:
        return 64 * 1024 * 1024  # conservative fallback (v7x per-TensorCore)


def _vmem_budget_bytes():
    # Leave ~25% headroom for compiler scratch / pipeline buffers.
    return int(_vmem_capacity_bytes() * 3 // 4)


def _vmem_limit(needed_bytes):
    cap = _vmem_budget_bytes()
    return int(min(max(int(needed_bytes) * 3 // 2, 32 * 1024 * 1024), cap))


# ---------------------------------------------------------------------------
# Model-load-time adjacency preparation (NOT in the per-call path)
# ---------------------------------------------------------------------------
def prepare_adjacency(adj_list, dtype=jnp.bfloat16):
    """Stack, transpose and cast the adjacency matrices once.

    The kernels consume adj^T (so nodes land on the MXU column / lane axis).
    Call this at model-load time; doing it per forward call would re-read the
    only O(N^2) tensor from HBM every step.
    """
    adjT = jnp.stack([a.T for a in adj_list], axis=0)
    return adjT.astype(dtype)


# ---------------------------------------------------------------------------
# Fused kernel: whole adj^T resident per branch (small / medium N)
# ---------------------------------------------------------------------------
def _gcn_www_fused_kernel(adjT_ref, s1t_ref, b1t_ref, w2t_ref, b2t_ref,
                          w3t_ref, b3t_ref, wdt_ref, bdt_ref, out_ref):
    """One grid step = one branch (one adjacency).  Transposed dataflow.

    GraphConvolution(x, adj) = adj @ (x @ W) + b, expressed transposed:
      h1^T = s1^T @ adj^T + b1^T          (s1 = x @ W1, hoisted to wrapper)
      h2^T = (W2^T @ relu(h1^T)) @ adj^T + b2^T
      h3^T = (W3^T @ relu(h2^T)) @ adj^T + b3^T
      out^T = Wd^T @ relu(h3^T) + bd^T    -> (nclass, N), lane-dense in N
    """
    f32, bf16 = jnp.float32, jnp.bfloat16
    adjT = adjT_ref[...]                                            # (N, N) bf16

    # gc1
    h1 = jnp.dot(s1t_ref[...], adjT, preferred_element_type=f32) + b1t_ref[...]
    h1 = jnp.maximum(h1, 0.0)
    # TODO(synk): F.dropout (training mode) is identity here (eval semantics).

    # gc2
    s2 = jnp.dot(w2t_ref[...], h1.astype(bf16), preferred_element_type=f32)
    h2 = jnp.dot(s2.astype(bf16), adjT, preferred_element_type=f32) + b2t_ref[...]
    h2 = jnp.maximum(h2, 0.0)

    # gc3
    s3 = jnp.dot(w3t_ref[...], h2.astype(bf16), preferred_element_type=f32)
    h3 = jnp.dot(s3.astype(bf16), adjT, preferred_element_type=f32) + b3t_ref[...]

    # dense head on relu(h3)
    h3r = jnp.maximum(h3, 0.0)
    out = jnp.dot(wdt_ref[...], h3r.astype(bf16), preferred_element_type=f32)
    out_ref[...] = (out + bdt_ref[...]).astype(out_ref.dtype)


def _forward_fused(adjT_stack, s1t, b1t, w2t, b2t, w3t, b3t, wdt, bdt,
                   vmem_needed):
    nb, n, _ = adjT_stack.shape
    nclass = wdt.shape[0]
    nh2, nh3, nh4 = s1t.shape[0], w2t.shape[0], w3t.shape[0]
    itemsize = adjT_stack.dtype.itemsize

    flops = nb * (2 * n * n * (nh2 + nh3 + nh4)
                  + 2 * n * (nh3 * nh2 + nh4 * nh3 + nclass * nh4))
    bytes_accessed = (nb * n * n * itemsize + nb * nclass * n * 4
                      + 2 * (s1t.size + w2t.size + w3t.size + wdt.size)
                      + 4 * (b1t.size + b2t.size + b3t.size + bdt.size))

    def full(shape):
        return pl.BlockSpec(shape, lambda b: tuple(0 for _ in shape))

    outT = pl.pallas_call(
        _gcn_www_fused_kernel,
        out_shape=jax.ShapeDtypeStruct((nb, nclass, n), jnp.float32),
        grid=(nb,),
        in_specs=[
            pl.BlockSpec((None, n, n), lambda b: (b, 0, 0)),   # adj^T, this branch
            full(s1t.shape), full(b1t.shape),
            full(w2t.shape), full(b2t.shape),
            full(w3t.shape), full(b3t.shape),
            full(wdt.shape), full(bdt.shape),
        ],
        out_specs=pl.BlockSpec((None, nclass, n), lambda b: (b, 0, 0)),
        compiler_params=pltpu.CompilerParams(
            dimension_semantics=("parallel",),                 # megacore on v7x
            vmem_limit_bytes=_vmem_limit(vmem_needed)),
        cost_estimate=pl.CostEstimate(flops=int(flops), transcendentals=0,
                                      bytes_accessed=int(bytes_accessed)),
    )(adjT_stack, s1t, b1t, w2t, b2t, w3t, b3t, wdt, bdt)
    return outT                                                 # (nb, nclass, N)


# ---------------------------------------------------------------------------
# Streamed kernel: one GC layer, adj^T tiled over (contraction, columns)
# ---------------------------------------------------------------------------
def _gc_adj_tiled_kernel(adjT_ref, st_ref, bt_ref, out_ref, acc_ref, *,
                         apply_relu):
    """h^T[:, j_tile] += s^T[:, k_tile] @ adj^T[k_tile, j_tile]  (+bias/relu)."""
    @pl.when(pl.program_id(2) == 0)
    def _():
        acc_ref[...] = jnp.zeros_like(acc_ref)

    acc_ref[...] += jnp.dot(st_ref[...], adjT_ref[...],
                            preferred_element_type=jnp.float32)

    @pl.when(pl.program_id(2) == pl.num_programs(2) - 1)
    def _():
        h = acc_ref[...] + bt_ref[...]
        if apply_relu:
            h = jnp.maximum(h, 0.0)
        out_ref[...] = h.astype(out_ref.dtype)


def _gc_layer_streamed(adjT_stack, st, bt, *, apply_relu, tile_n):
    nb, n, _ = adjT_stack.shape
    f_out = st.shape[1]
    if tile_n % 128 != 0 or n % tile_n != 0:
        tile_n = n                       # fall back to un-tiled for awkward N
    n_tiles = n // tile_n
    itemsize = adjT_stack.dtype.itemsize

    needed = (2 * tile_n * tile_n * itemsize          # adj^T block (double-buf)
              + 2 * f_out * tile_n * st.dtype.itemsize * 2  # st + out blocks
              + f_out * tile_n * 4                    # f32 accumulator
              + (64 << 10))
    cost = pl.CostEstimate(
        flops=int(2 * nb * f_out * n * n),
        transcendentals=0,
        bytes_accessed=int(nb * n * n * itemsize
                           + 2 * nb * f_out * n * st.dtype.itemsize))

    return pl.pallas_call(
        functools.partial(_gc_adj_tiled_kernel, apply_relu=apply_relu),
        out_shape=jax.ShapeDtypeStruct((nb, f_out, n), jnp.bfloat16),
        grid=(nb, n_tiles, n_tiles),                  # (branch, col, contraction)
        in_specs=[
            pl.BlockSpec((None, tile_n, tile_n), lambda b, j, k: (b, k, j)),
            pl.BlockSpec((None, f_out, tile_n), lambda b, j, k: (b, 0, k)),
            pl.BlockSpec((f_out, 1), lambda b, j, k: (0, 0)),
        ],
        out_specs=pl.BlockSpec((None, f_out, tile_n), lambda b, j, k: (b, 0, j)),
        scratch_shapes=[pltpu.VMEM((f_out, tile_n), jnp.float32)],
        compiler_params=pltpu.CompilerParams(
            dimension_semantics=("parallel", "parallel", "arbitrary"),
            vmem_limit_bytes=_vmem_limit(needed)),
        cost_estimate=cost,
    )(adjT_stack, st, bt)


def _forward_streamed(adjT_stack, s1t, b1t, w2t, b2t, w3t, b3t, wd_t, bd,
                      tile_n):
    nb = adjT_stack.shape[0]
    bf16 = jnp.bfloat16

    s1t_b = jnp.broadcast_to(s1t, (nb,) + s1t.shape)            # tiny
    h1t = _gc_layer_streamed(adjT_stack, s1t_b, b1t, apply_relu=True,
                             tile_n=tile_n)                     # (nb, nh2, N)
    s2t = jnp.einsum('fg,bgn->bfn', w2t, h1t.astype(jnp.float32)).astype(bf16)
    h2t = _gc_layer_streamed(adjT_stack, s2t, b2t, apply_relu=True,
                             tile_n=tile_n)                     # (nb, nh3, N)
    s3t = jnp.einsum('fg,bgn->bfn', w3t, h2t.astype(jnp.float32)).astype(bf16)
    h3t = _gc_layer_streamed(adjT_stack, s3t, b3t, apply_relu=False,
                             tile_n=tile_n)                     # (nb, nh4, N)

    # Tiny nh4 -> nclass dense head kept outside the kernel on this path.
    h3r = jnp.maximum(h3t.astype(jnp.float32), 0.0)
    logits = jnp.einsum('bfn,fc->bnc', h3r, wd_t) + bd          # (nb, N, nclass)
    return logits


# ---------------------------------------------------------------------------
# Public forward
# ---------------------------------------------------------------------------
@functools.partial(jax.jit, static_argnames=("tile_n", "force_streamed"))
def gcn_www_forward(x, adjT_stack, params, *, tile_n=512, force_streamed=False):
    """GCN_WWW forward.

    adjT_stack: (4, N, N) bf16, pre-transposed adjacencies in branch order
                [adj5, adj4, adj3, adj1] (see prepare_adjacency).
    Returns (x1_dense, x2_dense, x3_dense, x4_dense), each (N, nclass) f32.
    """
    w1, b1, w2, b2, w3, b3, wd_t, bd = params
    nb, n, _ = adjT_stack.shape
    nclass = wd_t.shape[1]
    bf16 = jnp.bfloat16

    # Branch-invariant x @ W1, hoisted and transposed: (nh2, N), nodes on lanes.
    s1t = jnp.dot(x, w1, preferred_element_type=jnp.float32).T.astype(bf16)
    b1t, b2t, b3t = b1.T, b2.T, b3.T                      # (nh, 1) f32
    w2t, w3t = w2.T.astype(bf16), w3.T.astype(bf16)       # (out, in) bf16
    wdt, bdt = wd_t.T.astype(bf16), bd.T                  # (nclass, nh4), (nclass, 1)

    # Whole-adjT-resident eligibility (per-generation VMEM budget).
    small = (2 * (s1t.size + w2t.size + w3t.size + wdt.size)
             + 4 * (b1t.size + b2t.size + b3t.size + bdt.size))
    resident_vmem = (2 * n * n * adjT_stack.dtype.itemsize
                     + 2 * nclass * n * 4 + 2 * small + (64 << 10))

    if force_streamed or resident_vmem > _vmem_budget_bytes():
        out = _forward_streamed(adjT_stack, s1t, b1t, w2t, b2t, w3t, b3t,
                                wd_t, bd, tile_n)               # (nb, N, nclass)
    else:
        outT = _forward_fused(adjT_stack, s1t, b1t, w2t, b2t, w3t, b3t,
                              wdt, bdt, resident_vmem)          # (nb, nclass, N)
        out = jnp.transpose(outT, (0, 2, 1))                    # (nb, N, nclass)

    # out[0] -> x1_dense (adj5), out[1] -> x2_dense (adj4),
    # out[2] -> x3_dense (adj3), out[3] -> x4_dense (adj1)
    return out[0], out[1], out[2], out[3]


# ---------------------------------------------------------------------------
# Params / reference
# ---------------------------------------------------------------------------
def init_params(key, n_feat, nhid2, nhid3, nhid4, nclass):
    """Deterministic init matching the shapes in GCN_WWW.__init__."""
    ks = jax.random.split(key, 8)

    def gc_init(kw, kb, fan_in, fan_out):
        stdv = 1.0 / math.sqrt(fan_out)
        w = jax.random.uniform(kw, (fan_in, fan_out), jnp.float32, -stdv, stdv)
        b = jax.random.uniform(kb, (1, fan_out), jnp.float32, -stdv, stdv)
        return w, b

    w1, b1 = gc_init(ks[0], ks[1], n_feat, nhid2)
    w2, b2 = gc_init(ks[2], ks[3], nhid2, nhid3)
    w3, b3 = gc_init(ks[4], ks[5], nhid3, nhid4)
    bound = 1.0 / math.sqrt(nhid4)
    wd_t = jax.random.uniform(ks[6], (nhid4, nclass), jnp.float32, -bound, bound)
    bd = jax.random.uniform(ks[7], (1, nclass), jnp.float32, -bound, bound)
    return (w1, b1, w2, b2, w3, b3, wd_t, bd)


def reference_forward(x, adj_stack, params):
    """Pure-JAX f32 reference with original module semantics (eval-mode dropout)."""
    w1, b1, w2, b2, w3, b3, wd_t, bd = params
    outs = []
    for i in range(adj_stack.shape[0]):
        adj = adj_stack[i]
        h1 = jnp.maximum(adj @ (x @ w1) + b1, 0.0)
        h2 = jnp.maximum(adj @ (h1 @ w2) + b2, 0.0)
        h3 = adj @ (h2 @ w3) + b3
        outs.append(jnp.maximum(h3, 0.0) @ wd_t + bd)
    return tuple(outs)


if __name__ == "__main__":
    # Small shapes consistent with the module's forward.
    N, nFeat, nhid2, nhid3, nhid4, nclass = 256, 32, 16, 16, 16, 4

    key = jax.random.PRNGKey(0)
    kx, ka, kp = jax.random.split(key, 3)

    x = jax.random.normal(kx, (N, nFeat), jnp.float32)
    adj_raw = jax.random.uniform(ka, (5, N, N), jnp.float32)
    adj_raw = adj_raw / adj_raw.sum(axis=-1, keepdims=True)    # GCN-style normalization
    adj1, adj2, adj3, adj4, adj5 = (adj_raw[i] for i in range(5))

    params = init_params(kp, nFeat, nhid2, nhid3, nhid4, nclass)

    # One-time (model-load) adjacency prep in branch order adj5, adj4, adj3, adj1.
    branch_adjs = (adj5, adj4, adj3, adj1)
    adjT_stack = jax.block_until_ready(prepare_adjacency(branch_adjs))

    # Fused whole-adjT-resident path (auto-selected at these shapes).
    outs_fused = gcn_www_forward(x, adjT_stack, params)
    # Streamed / tiled path (the large-N structure), exercised explicitly.
    outs_stream = gcn_www_forward(x, adjT_stack, params, tile_n=128,
                                  force_streamed=True)
    jax.block_until_ready((outs_fused, outs_stream))

    ref = reference_forward(x, jnp.stack(branch_adjs, axis=0), params)
    for got_f, got_s, want in zip(outs_fused, outs_stream, ref):
        assert got_f.shape == want.shape and got_s.shape == want.shape
        assert jnp.allclose(got_f, want, atol=5e-2, rtol=5e-2), (
            float(jnp.max(jnp.abs(got_f - want))))
        assert jnp.allclose(got_s, want, atol=5e-2, rtol=5e-2), (
            float(jnp.max(jnp.abs(got_s - want))))

    print("KERNEL_OK")
</pallas_src>

<mosaic_0001>
module attributes {stable_mosaic.version = 11 : i64} {
  func.func @_gcn_www_fused_kernel(%arg0: i32, %arg1: memref<1x256x256xbf16, #tpu.memory_space<vmem>>, %arg2: memref<16x256xbf16, #tpu.memory_space<vmem>>, %arg3: memref<16x1xf32, #tpu.memory_space<vmem>>, %arg4: memref<16x16xbf16, #tpu.memory_space<vmem>>, %arg5: memref<16x1xf32, #tpu.memory_space<vmem>>, %arg6: memref<16x16xbf16, #tpu.memory_space<vmem>>, %arg7: memref<16x1xf32, #tpu.memory_space<vmem>>, %arg8: memref<4x16xbf16, #tpu.memory_space<vmem>>, %arg9: memref<4x1xf32, #tpu.memory_space<vmem>>, %arg10: memref<1x4x256xf32, #tpu.memory_space<vmem>>) attributes {dimension_semantics = [#tpu.dimension_semantics<parallel>], iteration_bounds = array<i64: 4>, scalar_prefetch = 0 : i64, scratch_operands = 0 : i64, tpu.core_type = #tpu.core_type<tc>, window_params = [{transform_indices = @transform_0, window_bounds = array<i64: 1, 256, 256>}, {pipeline_mode = #tpu.pipeline_mode<synchronous>, transform_indices = @transform_1, window_bounds = array<i64: 16, 256>}, {pipeline_mode = #tpu.pipeline_mode<synchronous>, transform_indices = @transform_2, window_bounds = array<i64: 16, 1>}, {pipeline_mode = #tpu.pipeline_mode<synchronous>, transform_indices = @transform_3, window_bounds = array<i64: 16, 16>}, {pipeline_mode = #tpu.pipeline_mode<synchronous>, transform_indices = @transform_4, window_bounds = array<i64: 16, 1>}, {pipeline_mode = #tpu.pipeline_mode<synchronous>, transform_indices = @transform_5, window_bounds = array<i64: 16, 16>}, {pipeline_mode = #tpu.pipeline_mode<synchronous>, transform_indices = @transform_6, window_bounds = array<i64: 16, 1>}, {pipeline_mode = #tpu.pipeline_mode<synchronous>, transform_indices = @transform_7, window_bounds = array<i64: 4, 16>}, {pipeline_mode = #tpu.pipeline_mode<synchronous>, transform_indices = @transform_8, window_bounds = array<i64: 4, 1>}, {transform_indices = @transform_9, window_bounds = array<i64: 1, 4, 256>}]} {
    %c0 = arith.constant 0 : index
    %c0_0 = arith.constant 0 : index
    %c0_1 = arith.constant 0 : index
    %0 = vector.load %arg1[%c0, %c0_0, %c0_1] : memref<1x256x256xbf16, #tpu.memory_space<vmem>>, vector<1x256x256xbf16>
    %1 = vector.shape_cast %0 : vector<1x256x256xbf16> to vector<256x256xbf16>
    %c0_2 = arith.constant 0 : index
    %c0_3 = arith.constant 0 : index
    %2 = vector.load %arg2[%c0_2, %c0_3] : memref<16x256xbf16, #tpu.memory_space<vmem>>, vector<16x256xbf16>
    %cst = arith.constant dense<0.000000e+00> : vector<16x256xf32>
    %3 = tpu.matmul %2, %1, %cst {dimension_numbers = #tpu.dot_dimension_numbers<[1], [0], [0], [1], [0, 0, 1, 1], [], []>} : vector<16x256xbf16>, vector<256x256xbf16>, vector<16x256xf32> -> vector<16x256xf32>
    %c0_4 = arith.constant 0 : index
    %c0_5 = arith.constant 0 : index
    %4 = vector.load %arg3[%c0_4, %c0_5] : memref<16x1xf32, #tpu.memory_space<vmem>>, vector<16x1xf32>
    %5 = vector.broadcast %4 : vector<16x1xf32> to vector<16x256xf32>
    %6 = arith.addf %3, %5 : vector<16x256xf32>
    %cst_6 = arith.constant 0.000000e+00 : f32
    %7 = vector.broadcast %cst_6 : f32 to vector<16x256xf32>
    %8 = arith.maximumf %6, %7 : vector<16x256xf32>
    %c0_7 = arith.constant 0 : index
    %c0_8 = arith.constant 0 : index
    %9 = vector.load %arg4[%c0_7, %c0_8] : memref<16x16xbf16, #tpu.memory_space<vmem>>, vector<16x16xbf16>
    %10 = arith.truncf %8 : vector<16x256xf32> to vector<16x256xbf16>
    %cst_9 = arith.constant dense<0.000000e+00> : vector<16x256xf32>
    %11 = tpu.matmul %9, %10, %cst_9 {dimension_numbers = #tpu.dot_dimension_numbers<[1], [0], [0], [1], [0, 0, 1, 1], [], []>} : vector<16x16xbf16>, vector<16x256xbf16>, vector<16x256xf32> -> vector<16x256xf32>
    %12 = arith.truncf %11 : vector<16x256xf32> to vector<16x256xbf16>
    %cst_10 = arith.constant dense<0.000000e+00> : vector<16x256xf32>
    %13 = tpu.matmul %12, %1, %cst_10 {dimension_numbers = #tpu.dot_dimension_numbers<[1], [0], [0], [1], [0, 0, 1, 1], [], []>} : vector<16x256xbf16>, vector<256x256xbf16>, vector<16x256xf32> -> vector<16x256xf32>
    %c0_11 = arith.constant 0 : index
    %c0_12 = arith.constant 0 : index
    %14 = vector.load %arg5[%c0_11, %c0_12] : memref<16x1xf32, #tpu.memory_space<vmem>>, vector<16x1xf32>
    %15 = vector.broadcast %14 : vector<16x1xf32> to vector<16x256xf32>
    %16 = arith.addf %13, %15 : vector<16x256xf32>
    %cst_13 = arith.constant 0.000000e+00 : f32
    %17 = vector.broadcast %cst_13 : f32 to vector<16x256xf32>
    %18 = arith.maximumf %16, %17 : vector<16x256xf32>
    %c0_14 = arith.constant 0 : index
    %c0_15 = arith.constant 0 : index
    %19 = vector.load %arg6[%c0_14, %c0_15] : memref<16x16xbf16, #tpu.memory_space<vmem>>, vector<16x16xbf16>
    %20 = arith.truncf %18 : vector<16x256xf32> to vector<16x256xbf16>
    %cst_16 = arith.constant dense<0.000000e+00> : vector<16x256xf32>
    %21 = tpu.matmul %19, %20, %cst_16 {dimension_numbers = #tpu.dot_dimension_numbers<[1], [0], [0], [1], [0, 0, 1, 1], [], []>} : vector<16x16xbf16>, vector<16x256xbf16>, vector<16x256xf32> -> vector<16x256xf32>
    %22 = arith.truncf %21 : vector<16x256xf32> to vector<16x256xbf16>
    %cst_17 = arith.constant dense<0.000000e+00> : vector<16x256xf32>
    %23 = tpu.matmul %22, %1, %cst_17 {dimension_numbers = #tpu.dot_dimension_numbers<[1], [0], [0], [1], [0, 0, 1, 1], [], []>} : vector<16x256xbf16>, vector<256x256xbf16>, vector<16x256xf32> -> vector<16x256xf32>
    %c0_18 = arith.constant 0 : index
    %c0_19 = arith.constant 0 : index
    %24 = vector.load %arg7[%c0_18, %c0_19] : memref<16x1xf32, #tpu.memory_space<vmem>>, vector<16x1xf32>
    %25 = vector.broadcast %24 : vector<16x1xf32> to vector<16x256xf32>
    %26 = arith.addf %23, %25 : vector<16x256xf32>
    %cst_20 = arith.constant 0.000000e+00 : f32
    %27 = vector.broadcast %cst_20 : f32 to vector<16x256xf32>
    %28 = arith.maximumf %26, %27 : vector<16x256xf32>
    %c0_21 = arith.constant 0 : index
    %c0_22 = arith.constant 0 : index
    %29 = vector.load %arg8[%c0_21, %c0_22] : memref<4x16xbf16, #tpu.memory_space<vmem>>, vector<4x16xbf16>
    %30 = arith.truncf %28 : vector<16x256xf32> to vector<16x256xbf16>
    %cst_23 = arith.constant dense<0.000000e+00> : vector<4x256xf32>
    %31 = tpu.matmul %29, %30, %cst_23 {dimension_numbers = #tpu.dot_dimension_numbers<[1], [0], [0], [1], [0, 0, 1, 1], [], []>} : vector<4x16xbf16>, vector<16x256xbf16>, vector<4x256xf32> -> vector<4x256xf32>
    %c0_24 = arith.constant 0 : index
    %c0_25 = arith.constant 0 : index
    %32 = vector.load %arg9[%c0_24, %c0_25] : memref<4x1xf32, #tpu.memory_space<vmem>>, vector<4x1xf32>
    %33 = vector.broadcast %32 : vector<4x1xf32> to vector<4x256xf32>
    %34 = arith.addf %31, %33 : vector<4x256xf32>
    %c0_26 = arith.constant 0 : index
    %c0_27 = arith.constant 0 : index
    %c0_28 = arith.constant 0 : index
    %35 = vector.load %arg10[%c0_26, %c0_27, %c0_28] : memref<1x4x256xf32, #tpu.memory_space<vmem>>, vector<1x4x256xf32>
    %36 = vector.shape_cast %35 : vector<1x4x256xf32> to vector<4x256xf32>
    %37 = vector.shape_cast %34 : vector<4x256xf32> to vector<1x4x256xf32>
    tpu.vector_store %arg10[%c0_26, %c0_27, %c0_28], %37 {strides = array<i32>} : memref<1x4x256xf32, #tpu.memory_space<vmem>>, vector<1x4x256xf32>,
    return
  }
  func.func @transform_0(%arg0: i32) -> (i32, i32, i32) {
    %c0_i32 = arith.constant 0 : i32
    %c0_i32_0 = arith.constant 0 : i32
    %c0_i32_1 = arith.constant 0 : i32
    return %arg0, %c0_i32, %c0_i32_0 : i32, i32, i32
  }
  func.func @transform_1(%arg0: i32) -> (i32, i32) {
    %c0_i32 = arith.constant 0 : i32
    %c0_i32_0 = arith.constant 0 : i32
    %c0_i32_1 = arith.constant 0 : i32
    return %c0_i32, %c0_i32_0 : i32, i32
  }
  func.func @transform_2(%arg0: i32) -> (i32, i32) {
    %c0_i32 = arith.constant 0 : i32
    %c0_i32_0 = arith.constant 0 : i32
    %c0_i32_1 = arith.constant 0 : i32
    return %c0_i32, %c0_i32_0 : i32, i32
  }
  func.func @transform_3(%arg0: i32) -> (i32, i32) {
    %c0_i32 = arith.constant 0 : i32
    %c0_i32_0 = arith.constant 0 : i32
    %c0_i32_1 = arith.constant 0 : i32
    return %c0_i32, %c0_i32_0 : i32, i32
  }
  func.func @transform_4(%arg0: i32) -> (i32, i32) {
    %c0_i32 = arith.constant 0 : i32
    %c0_i32_0 = arith.constant 0 : i32
    %c0_i32_1 = arith.constant 0 : i32
    return %c0_i32, %c0_i32_0 : i32, i32
  }
  func.func @transform_5(%arg0: i32) -> (i32, i32) {
    %c0_i32 = arith.constant 0 : i32
    %c0_i32_0 = arith.constant 0 : i32
    %c0_i32_1 = arith.constant 0 : i32
    return %c0_i32, %c0_i32_0 : i32, i32
  }
  func.func @transform_6(%arg0: i32) -> (i32, i32) {
    %c0_i32 = arith.constant 0 : i32
    %c0_i32_0 = arith.constant 0 : i32
    %c0_i32_1 = arith.constant 0 : i32
    return %c0_i32, %c0_i32_0 : i32, i32
  }
  func.func @transform_7(%arg0: i32) -> (i32, i32) {
    %c0_i32 = arith.constant 0 : i32
    %c0_i32_0 = arith.constant 0 : i32
    %c0_i32_1 = arith.constant 0 : i32
    return %c0_i32, %c0_i32_0 : i32, i32
  }
  func.func @transform_8(%arg0: i32) -> (i32, i32) {
    %c0_i32 = arith.constant 0 : i32
    %c0_i32_0 = arith.constant 0 : i32
    %c0_i32_1 = arith.constant 0 : i32
    return %c0_i32, %c0_i32_0 : i32, i32
  }
  func.func @transform_9(%arg0: i32) -> (i32, i32, i32) {
    %c0_i32 = arith.constant 0 : i32
    %c0_i32_0 = arith.constant 0 : i32
    %c0_i32_1 = arith.constant 0 : i32
    return %arg0, %c0_i32, %c0_i32_0 : i32, i32, i32
  }
}

</mosaic_0001>

<bundles_post_ra>
// kernel: gcn_www_forward.1
= control target key start
LH: loop header
LB: loop body
LE: loop exit
PB: predicated region body
PF: predicated region fallthrough
CT: control target
= control target key end

     0   :  { %14 = vsyncpa [#allocation3], 0  ;;  %s1591_s0 = inlined_call_operand.hbm [shape: bf16[4,256,256], index: 0, kind: input, shape index: {}]   ;;  %s1592_s1 = inlined_call_operand.vmem [shape: bf16[16,256], index: 1, kind: input, shape index: {}]   ;;  %s1593_s2 = inlined_call_operand.vmem [shape: f32[16,1], index: 2, kind: input, shape index: {}]   ;;  %s1594_s3 = inlined_call_operand.vmem [shape: bf16[16,16], index: 3, kind: input, shape index: {}]   ;;  %s1595_s4 = inlined_call_operand.vmem [shape: f32[16,1], index: 4, kind: input, shape index: {}]   ;;  %s1596_s5 = inlined_call_operand.vmem [shape: bf16[16,16], index: 5, kind: input, shape index: {}]   ;;  %s1597_s6 = inlined_call_operand.vmem [shape: f32[16,1], index: 6, kind: input, shape index: {}]   ;;  %s1598_s7 = inlined_call_operand.vmem [shape: bf16[4,16], index: 7, kind: input, shape index: {}]   ;;  %s1599_s8 = inlined_call_operand.vmem [shape: f32[4,1], index: 8, kind: input, shape index: {}]   ;;  %s1600_s9 = inlined_call_operand.vmem [shape: f32[4,4,256], index: 9, kind: output, shape index: {}]  }
   0x1   :  { %16 = vsyncpa [#allocation3 + $0x1], 0  ;;  %s1245_s30 = smov 0   ;;  %s1247_s10 = smov 0  }
   0x2   :  { %s1249_s11 = smov 0   ;;  %s1251_s12 = smov 0  }
   0x3 LB: > { %s1264_s13 = sadd.s32 4294967295, %s1189_s12   ;;  %s1267_s14 = sadd.s32 1, %s1189_s12   ;;  %s1189_s12 = sphi %s1251_s12, %s1607_s12   ;;  %s1185_s11 = sphi %s1249_s11, %s1606_s11   ;;  %s1181_s10 = sphi %s1247_s10, %s1605_s10   ;;  %s1177_s30 = sphi %s1245_s30, %s1604_s30  }
   0x4   : > { %s26_s15 = ssub.s32 %s1189_s12, %s1267_s14  ;;  %s29_s16 = sadd.s32 1, %s1185_s11 }
   0x5   : > { %p27_p0 = scmp.eq.s32.totalorder %s26_s15, 0  ;;  %p36_p1 = scmp.ne.s32.totalorder %s1185_s11, %s1181_s10 }
   0x6   : > { %p37_p2 = scmp.eq.s32.totalorder %s1189_s12, 0  ;;  %p42_p3 = scmp.ne.s32.totalorder %s1181_s10, %s1177_s30 }
   0x7   : > { %s1277_s17 = scalar_select %p27_p0, %s1185_s11, %s29_s16  }
   0x8   : > { %p38_p4 = por %p37_p2, %p36_p1  ;;  %p43_p5 = scmp.eq.s32.totalorder %s1264_s13, 0 }
   0x9   : > { %p1034_p6 = scmp.lt.s32.totalorder %s1189_s12, 4  ;;  %s284_s19 = sand.u32 1, %s1185_s11  }
   0xa   : > { %p1281_p7 = por %p43_p5, %p42_p3  ;;  %s978_s20 = sshll.u32 %s284_s19, 8 }
   0xb   : > { %s1026_s21 = sshll.u32 %s1189_s12, 12  ;;  %s288_s25 = scalar_lea.vmem [#allocation2], %s978_s20 }
   0xc   : > { %s1290_s24 = scalar_lea.hbm %s1591_s0, %s1026_s21  ;;  %s295_s26 = sshll.u32 %s288_s25, 4  ;;  %s1292_s26 = int_to_ptr.vmem [resolvable:$true] %s295_s26 }
   0xd   : > { %p1294_p8 = pnand %p1034_p6, %p38_p4  ;;  %s1299_s28 = scalar_lea.sflag [#allocation3], %s284_s19 }
   0xe   : > { %s1125_s29 = scalar_lea.hbm %s1290_s24, 4096  ;;  %s1130_s16 = scalar_lea.hbm %s1591_s0, 16384 }
   0xf   : > { %p1126_p10 = scmp.ne.s32.totalorder %s1290_s24, %s1125_s29  ;;  %p1127_p11 = pneg %p1294_p8 }
  0x10   : > { %p1131_p0 = scmp.lt.u32.totalorder %s1290_s24, %s1591_s0  ;;  %p1132_p1 = scmp.lt.u32.totalorder %s1130_s16, %s1125_s29 }
  0x11   : > { %p1128_p12 = pnand %p1127_p11, %p1126_p10  ;;  %p1134_p3 = scmp.lt.u32.totalorder %s1125_s29, %s1290_s24 }
  0x12   : > { %p1133_p2 = por %p1132_p1, %p1131_p0 }
  0x13   : > { %p1129_p13 = pneg %p1128_p12 }
  0x14   : > { %p1135_p4 = por %p1134_p3, %p1133_p2 }
  0x16   : > { %p1136_p5 = pnand %p1135_p4, %p1129_p13 }
  0x18   : > { %1139 = shalt.err (!%p1136_p5)
}
  0x19   : > { %s1140_s19 = scalar_lea.vmem %s1292_s26, 4096  ;;  %s1191_s22 = smov [#allocation2]  }
  0x1a   : > { %p1141_p6 = scmp.ne.s32.totalorder %s1292_s26, %s1140_s19  ;;  %s1145_s23 = sshll.u32 %s1191_s22, 4  ;;  %s1146_s23 = int_to_ptr.vmem [resolvable:$false] %s1145_s23 }
  0x1b   : > { %s1147_s25 = scalar_lea.vmem %s1146_s23, 8192  ;;  %p1148_p9 = scmp.lt.s32.totalorder %s1292_s26, %s1146_s23 }
  0x1c   : > { %p1143_p10 = pnand %p1141_p6, %p1127_p11  ;;  %p1149_p0 = scmp.lt.s32.totalorder %s1147_s25, %s1140_s19 }
  0x1e   : > { %p1144_p12 = pneg %p1143_p10  ;;  %p1150_p1 = por %p1149_p0, %p1148_p9 }
  0x20   : > { %p1151_p2 = pnand %p1150_p1, %p1144_p12 }
  0x22   : > { %1154 = shalt.err (!%p1151_p2)
}
  0x23   : > { %s1192_s29 = smov 128   ;;  %s1193_s30 = smov 8  }
  0x24   : > { %1033 = dma.hbm_to_vmem [thread:$0]  (!%p1294_p8), %s1290_s24, 4096, %s1292_s26, %s1299_s28, %s1192_s29, %s1192_s29, %s1193_s30  }
  0x25   : > { %p303_p11 = scmp.lt.s32.totalorder %s1189_s12, 5  ;;  %p1603_p13 = scmp.ge.s32.totalorder %s1189_s12, 1 }
  0x27   : > { %p304_p3 = pnand %p1603_p13, %p303_p11 }
  0x28   : > { %s309_s15 = sand.u32 (!%p304_p3), 1, %s1181_s10  }
  0x29   : > { %307 = sbr.rel (%p304_p3) target bundleno = 1444 (0x5a4), region = 56  ;;  %s982_s16 = sshll.u32 (!%p304_p3), %s309_s15, 8 }
  0x2a   : > { %s310_s20 = scalar_lea.sflag (!%p304_p3), [#allocation3], %s309_s15  ;;  %s1331_s21 = scalar_lea.vmem (!%p304_p3), [#allocation2], %s982_s16 }
  0x30   : > { %1172 = dma.done.wait (%p1281_p7), %s310_s20, 4096  }
  0x31   : > { %1174 = vsyncadd (%p1281_p7), %s310_s20, 4294963200  ;;  %v1194_v0 = vmov 0   ;;  %v1340_v1 = vld [vmem:[%s1331_s21 + $0x4] ss:$8 sps:$4 sm:$0xff]   ;;  %v1343_v2 = vld [vmem:[%s1331_s21] ss:$8 sps:$4 sm:$0xff]  }
  0x32   : > { %1070 = vset.pattern.permute.xlu0 %v1194_v0  ;;  %1071 = vset.pattern.permute.xlu1 %v1194_v0  ;;  %v1347_v3 = vld [vmem:[%s1331_s21 + $0x14] ss:$8 sps:$4 sm:$0xff]   ;;  %v1352_v4 = vld [vmem:[%s1331_s21 + $0x10] ss:$8 sps:$4 sm:$0xff]   ;;  %v1357_v5 = vld [vmem:[%s1331_s21 + $0x24] ss:$8 sps:$4 sm:$0xff]  }
  0x33   : > { %570 = vmatprep.subr.bf16.mxu0 %v1340_v1  ;;  %687 = vmatprep.subr.bf16.mxu1 %v1340_v1  ;;  %v1362_v6 = vld [vmem:[%s1331_s21 + $0x20] ss:$8 sps:$4 sm:$0xff]   ;;  %v1367_v7 = vld [vmem:[%s1331_s21 + $0x34] ss:$8 sps:$4 sm:$0xff]   ;;  %v1372_v8 = vld [vmem:[%s1331_s21 + $0x30] ss:$8 sps:$4 sm:$0xff]  }
  0x34   : > { %571 = vmatpush1.bf16.msra.mxu0 %v1343_v2  ;;  %688 = vmatpush1.bf16.msra.mxu1 %v1343_v2  ;;  %v1377_v9 = vld [vmem:[%s1331_s21 + $0x44] ss:$8 sps:$4 sm:$0xff]   ;;  %v1382_v10 = vld [vmem:[%s1331_s21 + $0x40] ss:$8 sps:$4 sm:$0xff]   ;;  %v1387_v11 = vld [vmem:[%s1331_s21 + $0x54] ss:$8 sps:$4 sm:$0xff]  }
  0x35   : > { %572 = vmatprep.subr.bf16.mxu0 %v1347_v3  ;;  %689 = vmatprep.subr.bf16.mxu1 %v1347_v3  ;;  %v1392_v12 = vld [vmem:[%s1331_s21 + $0x50] ss:$8 sps:$4 sm:$0xff]   ;;  %v1397_v13 = vld [vmem:[%s1331_s21 + $0x64] ss:$8 sps:$4 sm:$0xff]   ;;  %v1408_v16 = vld [vmem:[%s1331_s21 + $0x60] ss:$8 sps:$4 sm:$0xff]  }
  0x36   : > { %v1122_v14 = vld [vmem:[%s1592_s1 + $0x4] ss:$8 sps:$4 sm:$0xff]   ;;  %v1411_v17 = vld [vmem:[%s1331_s21 + $0x74] ss:$8 sps:$4 sm:$0xff]   ;;  %v1421_v19 = vld [vmem:[%s1331_s21 + $0x70] ss:$8 sps:$4 sm:$0xff]  }
  0x37   : > { %v388_v15 = vld [vmem:[%s1593_s2] sm:$0xff]  ;;  %v389_v18 = vld [vmem:[%s1593_s2 + $0x8] sm:$0xff]  ;;  %602 = vmatprep.mubr.bf16.mxu0 %v1122_v14  ;;  %v1438_v23 = vld [vmem:[%s1331_s21 + $0x94] ss:$8 sps:$4 sm:$0xff]   ;;  %vm626_vm0 = vcmask 130048   ;;  %p348_p7 = scmp.lt.s32.totalorder %s1264_s13, 3 }
  0x38   : > { %573 = vmatpush1.bf16.msra.mxu0 %v1352_v4  ;;  %690 = vmatpush1.bf16.msra.mxu1 %v1352_v4  ;;  %v1425_v20 = vld [vmem:[%s1331_s21 + $0x84] ss:$8 sps:$4 sm:$0xff]   ;;  %v1434_v22 = vld [vmem:[%s1331_s21 + $0x80] ss:$8 sps:$4 sm:$0xff]   ;;  %v1447_v25 = vld [vmem:[%s1331_s21 + $0x90] ss:$8 sps:$4 sm:$0xff]  }
  0x39   : > { %574 = vmatprep.subr.bf16.mxu0 %v1357_v5  ;;  %691 = vmatprep.subr.bf16.mxu1 %v1357_v5  ;;  %v791_v21 = vld [vmem:[%s1597_s6] sm:$0xff]  ;;  %v1461_v28 = vld [vmem:[%s1331_s21 + $0xb4] ss:$8 sps:$4 sm:$0xff]   ;;  %v1467_v29 = vld [vmem:[%s1331_s21 + $0xb0] ss:$8 sps:$4 sm:$0xff]   ;;  %s1609_s13 = smov (!%p348_p7, %s1264_s13), 3 }
  0x3a   : > { %392 = vperm.xlu0 %1070, %v388_v15   ;;  %v853_v24 = vld [vmem:[%s1599_s8] sm:$0xf]  ;;  %v1451_v26 = vld [vmem:[%s1331_s21 + $0xa4] ss:$8 sps:$4 sm:$0xff]   ;;  %v1481_v32 = vld [vmem:[%s1331_s21 + $0xd4] ss:$8 sps:$4 sm:$0xff]  }
  0x3b   : > { %v1457_v27 = vld [vmem:[%s1331_s21 + $0xa0] ss:$8 sps:$4 sm:$0xff]   ;;  %v1471_v30 = vld [vmem:[%s1331_s21 + $0xc4] ss:$8 sps:$4 sm:$0xff]   ;;  %v1487_v33 = vld [vmem:[%s1331_s21 + $0xd0] ss:$8 sps:$4 sm:$0xff]  }
  0x3c   : > { %575 = vmatpush1.bf16.msra.mxu0 %v1362_v6  ;;  %692 = vmatpush1.bf16.msra.mxu1 %v1362_v6  ;;  %v1477_v31 = vld [vmem:[%s1331_s21 + $0xc0] ss:$8 sps:$4 sm:$0xff]   ;;  %v1491_v34 = vld [vmem:[%s1331_s21 + $0xe4] ss:$8 sps:$4 sm:$0xff]   ;;  %v1501_v36 = vld [vmem:[%s1331_s21 + $0xf4] ss:$8 sps:$4 sm:$0xff]  }
  0x3d   : > { %576 = vmatprep.subr.bf16.mxu0 %v1367_v7  ;;  %693 = vmatprep.subr.bf16.mxu1 %v1367_v7  ;;  %v1497_v35 = vld [vmem:[%s1331_s21 + $0xe0] ss:$8 sps:$4 sm:$0xff]   ;;  %v1507_v37 = vld [vmem:[%s1331_s21 + $0xf0] ss:$8 sps:$4 sm:$0xff]   ;;  %s1027_s23 = sshll.u32 %s1609_s13, 3 }
  0x3e   : > { %397 = vperm.xlu0 %1070, %v389_v18   ;;  %v1120_v38 = vld [vmem:[%s1592_s1] ss:$8 sps:$4 sm:$0xff]   ;;  %s352_s30 = scalar_lea.vmem %s1600_s9, %s1027_s23 }
  0x3f   : > { %v1123_v55 = vld [vmem:[%s1594_s3] sm:$0xff]   ;;  %v676_v57 = vld [vmem:[%s1595_s4 + $0x8] sm:$0xff] }
  0x40   : > { %577 = vmatpush1.bf16.msra.mxu0 %v1372_v8  ;;  %694 = vmatpush1.bf16.msra.mxu1 %v1372_v8  ;;  %v675_v56 = vld [vmem:[%s1595_s4] sm:$0xff]  ;;  %v792_v58 = vld [vmem:[%s1597_s6 + $0x8] sm:$0xff] }
  0x41   : > { %578 = vmatprep.subr.bf16.mxu0 %v1377_v9  ;;  %695 = vmatprep.subr.bf16.mxu1 %v1377_v9  ;;  %v1124_v18 = vld [vmem:[%s1596_s5] sm:$0xff]  }
  0x42   : > { %795 = vperm.xlu0 %1070, %v791_v21   ;;  %679 = vperm.xlu1 %1071, %v675_v56  }
  0x44   : > { %579 = vmatpush1.bf16.msra.mxu0 %v1382_v10  ;;  %696 = vmatpush1.bf16.msra.mxu1 %v1382_v10 }
  0x45   : > { %580 = vmatprep.subr.bf16.mxu0 %v1387_v11  ;;  %697 = vmatprep.subr.bf16.mxu1 %v1387_v11 }
  0x46   : > { %856 = vperm.xlu0 %1070, %v853_v24   ;;  %684 = vperm.xlu1 %1071, %v676_v57  }
  0x48   : > { %581 = vmatpush1.bf16.msra.mxu0 %v1392_v12  ;;  %698 = vmatpush1.bf16.msra.mxu1 %v1392_v12 }
  0x49   : > { %582 = vmatprep.subr.bf16.mxu0 %v1397_v13  ;;  %699 = vmatprep.subr.bf16.mxu1 %v1397_v13 }
  0x4a   : > { %800 = vperm.xlu1 %1071, %v792_v58  }
  0x4c   : > { %583 = vmatpush1.bf16.msra.mxu0 %v1408_v16  ;;  %700 = vmatpush1.bf16.msra.mxu1 %v1408_v16 }
  0x4d   : > { %584 = vmatprep.subr.bf16.mxu0 %v1411_v17  ;;  %701 = vmatprep.subr.bf16.mxu1 %v1411_v17 }
  0x50   : > { %585 = vmatpush1.bf16.msra.mxu0 %v1421_v19  ;;  %702 = vmatpush1.bf16.msra.mxu1 %v1421_v19 }
  0x51   : > { %586 = vmatprep.subr.bf16.mxu0 %v1425_v20  ;;  %703 = vmatprep.subr.bf16.mxu1 %v1425_v20 }
  0x54   : > { %587 = vmatpush1.bf16.msra.mxu0 %v1434_v22  ;;  %704 = vmatpush1.bf16.msra.mxu1 %v1434_v22 }
  0x55   : > { %588 = vmatprep.subr.bf16.mxu0 %v1438_v23  ;;  %705 = vmatprep.subr.bf16.mxu1 %v1438_v23 }
  0x58   : > { %589 = vmatpush1.bf16.msra.mxu0 %v1447_v25  ;;  %706 = vmatpush1.bf16.msra.mxu1 %v1447_v25 }
  0x59   : > { %590 = vmatprep.subr.bf16.mxu0 %v1451_v26  ;;  %707 = vmatprep.subr.bf16.mxu1 %v1451_v26 }
  0x5c   : > { %591 = vmatpush1.bf16.msra.mxu0 %v1457_v27  ;;  %708 = vmatpush1.bf16.msra.mxu1 %v1457_v27 }
  0x5d   : > { %592 = vmatprep.subr.bf16.mxu0 %v1461_v28  ;;  %709 = vmatprep.subr.bf16.mxu1 %v1461_v28 }
  0x60   : > { %593 = vmatpush1.bf16.msra.mxu0 %v1467_v29  ;;  %710 = vmatpush1.bf16.msra.mxu1 %v1467_v29 }
  0x61   : > { %594 = vmatprep.subr.bf16.mxu0 %v1471_v30  ;;  %711 = vmatprep.subr.bf16.mxu1 %v1471_v30 }
  0x64   : > { %595 = vmatpush1.bf16.msra.mxu0 %v1477_v31  ;;  %712 = vmatpush1.bf16.msra.mxu1 %v1477_v31 }
  0x65   : > { %596 = vmatprep.subr.bf16.mxu0 %v1481_v32  ;;  %713 = vmatprep.subr.bf16.mxu1 %v1481_v32 }
  0x68   : > { %597 = vmatpush1.bf16.msra.mxu0 %v1487_v33  ;;  %714 = vmatpush1.bf16.msra.mxu1 %v1487_v33 }
  0x69   : > { %598 = vmatprep.subr.bf16.mxu0 %v1491_v34  ;;  %715 = vmatprep.subr.bf16.mxu1 %v1491_v34 }
  0x6c   : > { %599 = vmatpush1.bf16.msra.mxu0 %v1497_v35  ;;  %716 = vmatpush1.bf16.msra.mxu1 %v1497_v35 }
  0x6d   : > { %600 = vmatprep.subr.bf16.mxu0 %v1501_v36  ;;  %717 = vmatprep.subr.bf16.mxu1 %v1501_v36 }
  0x70   : > { %601 = vmatpush1.bf16.msra.mxu0 %v1507_v37  ;;  %718 = vmatpush1.bf16.msra.mxu1 %v1507_v37 }
  0x71   : > { %803 = vmatprep.subr.bf16.mxu1 %v1340_v1 }
  0x73   : > { %603 = vmatmul.mubr.bf16.vlgmr.msra.gmra.mrb[0].mxu0 %v1120_v38 }
  0x74   : > { %662 = vmatprep.mubr.bf16.mxu0 %v1194_v0 }
  0xb9   : > { %v393_v39 = vpop.permute.xlu0 %392 }
  0xbd   : > { %v398_v43 = vpop.permute.xlu0 %397 }
 0x146   : > { %v604_v40 = vpop.f32.mrb[0].mxu0 }
 0x147   : > { %v605_v41 = vadd.f32 %v604_v40, %v393_v39  ;;  %v606_v42 = vpop.f32.mrb[1].mxu0  ;;  %v850_v40 = vld [vmem:[%s1598_s7] sm:$0x3] }
 0x148   : > { %v607_v44 = vadd.f32 %v606_v42, %v393_v39  ;;  %v608_v45 = vpop.f32.mrb[2].mxu0 }
 0x149   : > { %v609_v46 = vadd.f32 %v608_v45, %v398_v43  ;;  %v610_v47 = vpop.f32.mrb[3].mxu0  ;;  %v613_v49 = vmax.f32 %v605_v41, 0.0 }
 0x14a   : > { %v611_v48 = vadd.f32 %v610_v47, %v398_v43  ;;  %v614_v51 = vmax.f32 %v607_v44, 0.0 }
 0x14b   : > { %v615_v50 = vmax.f32 %v609_v46, 0.0 }
 0x14c   : > { %v616_v52 = vmax.f32 %v611_v48, 0.0 }
 0x14d   : > { %v619_v53 = vpack.c.bf16 %v615_v50, %v613_v49 }
 0x14e   : > { %v620_v54 = vpack.c.bf16 %v616_v52, %v614_v51 }
 0x150   : > { %630 = vmatprep.subr.bf16.mxu0 %v620_v54 }
 0x151   : > { %631 = vmatpush1.bf16.msra.mxu0 %v619_v53 }
 0x154   : > { %1020 = vmatmul.mubr.msk.bf16.vlgmr.msra.gmra.mrb[4].mxu0 %vm626_vm0, %v1123_v55 }
 0x155   : > { %778 = vmatprep.mubr.bf16.mxu0 %v1194_v0 }
 0x227   : > { %v664_v59 = vpop.f32.mrb[4].mxu0 }
 0x228   : > { %v666_v60 = vpop.f32.mrb[5].mxu0 }
 0x229   : > { %v668_v61 = vpop.f32.mrb[6].mxu0 }
 0x22a   : > { %v673_v62 = vpack.c.bf16 %v668_v61, %v664_v59  ;;  %v670_v63 = vpop.f32.mrb[7].mxu0 }
 0x22b   : > { %v674_v1 = vpack.c.bf16 %v670_v63, %v666_v60 }
 0x22d   : > { %719 = vmatprep.mubr.bf16.mxu1 %v674_v1 }
 0x22e   : > { %720 = vmatmul.mubr.bf16.vlgmr.msra.gmra.mrb[0].mxu1 %v673_v62 }
 0x22f   : > { %804 = vmatpush1.bf16.msra.mxu1 %v1343_v2  ;;  %v680_v2 = vpop.permute.xlu1 %679 }
 0x230   : > { %805 = vmatprep.subr.bf16.mxu1 %v1347_v3 }
 0x233   : > { %806 = vmatpush1.bf16.msra.mxu1 %v1352_v4 }
 0x234   : > { %807 = vmatprep.subr.bf16.mxu1 %v1357_v5 }
 0x237   : > { %808 = vmatpush1.bf16.msra.mxu1 %v1362_v6  ;;  %v685_v6 = vpop.permute.xlu1 %684 }
 0x238   : > { %809 = vmatprep.subr.bf16.mxu1 %v1367_v7 }
 0x23b   : > { %810 = vmatpush1.bf16.msra.mxu1 %v1372_v8 }
 0x23c   : > { %811 = vmatprep.subr.bf16.mxu1 %v1377_v9 }
 0x23f   : > { %812 = vmatpush1.bf16.msra.mxu1 %v1382_v10 }
 0x240   : > { %813 = vmatprep.subr.bf16.mxu1 %v1387_v11 }
 0x243   : > { %814 = vmatpush1.bf16.msra.mxu1 %v1392_v12 }
 0x244   : > { %815 = vmatprep.subr.bf16.mxu1 %v1397_v13 }
 0x247   : > { %816 = vmatpush1.bf16.msra.mxu1 %v1408_v16 }
 0x248   : > { %817 = vmatprep.subr.bf16.mxu1 %v1411_v17 }
 0x24b   : > { %818 = vmatpush1.bf16.msra.mxu1 %v1421_v19 }
 0x24c   : > { %819 = vmatprep.subr.bf16.mxu1 %v1425_v20 }
 0x24f   : > { %820 = vmatpush1.bf16.msra.mxu1 %v1434_v22 }
 0x250   : > { %821 = vmatprep.subr.bf16.mxu1 %v1438_v23 }
 0x253   : > { %822 = vmatpush1.bf16.msra.mxu1 %v1447_v25  ;;  %v796_v25 = vpop.permute.xlu0 %795 }
 0x254   : > { %823 = vmatprep.subr.bf16.mxu1 %v1451_v26 }
 0x257   : > { %824 = vmatpush1.bf16.msra.mxu1 %v1457_v27  ;;  %v857_v41 = vpop.permute.xlu0 %856 }
 0x258   : > { %825 = vmatprep.subr.bf16.mxu1 %v1461_v28 }
 0x25b   : > { %826 = vmatpush1.bf16.msra.mxu1 %v1467_v29  ;;  %v801_v29 = vpop.permute.xlu1 %800 }
 0x25c   : > { %827 = vmatprep.subr.bf16.mxu1 %v1471_v30 }
 0x25f   : > { %828 = vmatpush1.bf16.msra.mxu1 %v1477_v31 }
 0x260   : > { %829 = vmatprep.subr.bf16.mxu1 %v1481_v32 }
 0x263   : > { %830 = vmatpush1.bf16.msra.mxu1 %v1487_v33 }
 0x264   : > { %831 = vmatprep.subr.bf16.mxu1 %v1491_v34 }
 0x267   : > { %832 = vmatpush1.bf16.msra.mxu1 %v1497_v35 }
 0x268   : > { %833 = vmatprep.subr.bf16.mxu1 %v1501_v36 }
 0x26b   : > { %834 = vmatpush1.bf16.msra.mxu1 %v1507_v37 }
 0x301   : > { %v721_v3 = vpop.f32.mrb[0].mxu1 }
 0x302   : > { %v722_v4 = vadd.f32 %v721_v3, %v680_v2  ;;  %v723_v5 = vpop.f32.mrb[1].mxu1 }
 0x303   : > { %v724_v7 = vadd.f32 %v723_v5, %v680_v2  ;;  %v725_v8 = vpop.f32.mrb[2].mxu1 }
 0x304   : > { %v726_v9 = vadd.f32 %v725_v8, %v685_v6  ;;  %v727_v10 = vpop.f32.mrb[3].mxu1  ;;  %v730_v12 = vmax.f32 %v722_v4, 0.0 }
 0x305   : > { %v728_v11 = vadd.f32 %v727_v10, %v685_v6  ;;  %v731_v14 = vmax.f32 %v724_v7, 0.0 }
 0x306   : > { %v732_v13 = vmax.f32 %v726_v9, 0.0 }
 0x307   : > { %v733_v15 = vmax.f32 %v728_v11, 0.0 }
 0x308   : > { %v736_v16 = vpack.c.bf16 %v732_v13, %v730_v12 }
 0x309   : > { %v737_v17 = vpack.c.bf16 %v733_v15, %v731_v14 }
 0x30b   : > { %746 = vmatprep.subr.bf16.mxu0 %v737_v17 }
 0x30c   : > { %747 = vmatpush1.bf16.msra.mxu0 %v736_v16 }
 0x30f   : > { %1022 = vmatmul.mubr.msk.bf16.vlgmr.msra.gmra.mrb[8].mxu0 %vm626_vm0, %v1124_v18 }
 0x310   : > { %894 = vmatprep.mubr.bf16.mxu0 %v1194_v0 }
 0x3e2   : > { %v780_v19 = vpop.f32.mrb[8].mxu0 }
 0x3e3   : > { %v782_v20 = vpop.f32.mrb[9].mxu0 }
 0x3e4   : > { %v784_v21 = vpop.f32.mrb[10].mxu0 }
 0x3e5   : > { %v789_v22 = vpack.c.bf16 %v784_v21, %v780_v19  ;;  %v786_v23 = vpop.f32.mrb[11].mxu0 }
 0x3e6   : > { %v790_v24 = vpack.c.bf16 %v786_v23, %v782_v20 }
 0x3e8   : > { %835 = vmatprep.mubr.bf16.mxu1 %v790_v24 }
 0x3e9   : > { %836 = vmatmul.mubr.bf16.vlgmr.msra.gmra.mrb[4].mxu1 %v789_v22 }
 0x4bc   : > { %v837_v26 = vpop.f32.mrb[4].mxu1 }
 0x4bd   : > { %v838_v27 = vadd.f32 %v837_v26, %v796_v25  ;;  %v839_v28 = vpop.f32.mrb[5].mxu1 }
 0x4be   : > { %v840_v30 = vadd.f32 %v839_v28, %v796_v25  ;;  %v841_v31 = vpop.f32.mrb[6].mxu1 }
 0x4bf   : > { %v842_v32 = vadd.f32 %v841_v31, %v801_v29  ;;  %v843_v33 = vpop.f32.mrb[7].mxu1  ;;  %v846_v34 = vmax.f32 %v838_v27, 0.0 }
 0x4c0   : > { %v844_v0 = vadd.f32 %v843_v33, %v801_v29  ;;  %v847_v36 = vmax.f32 %v840_v30, 0.0 }
 0x4c1   : > { %v848_v35 = vmax.f32 %v842_v32, 0.0 }
 0x4c2   : > { %v849_v37 = vmax.f32 %v844_v0, 0.0 }
 0x4c3   : > { %v851_v38 = vpack.c.bf16 %v848_v35, %v846_v34 }
 0x4c4   : > { %v852_v39 = vpack.c.bf16 %v849_v37, %v847_v36 }
 0x4c6   : > { %862 = vmatprep.subr.bf16.mxu0 %v852_v39 }
 0x4c7   : > { %863 = vmatpush1.bf16.msra.mxu0 %v851_v38 }
 0x4ca   : > { %1023 = vmatmul.mubr.msk.bf16.vlgmr.msra.gmra.mrb[12].mxu0 %vm626_vm0, %v850_v40 }
 0x59d   : > { %v896_v42 = vpop.f32.mrb[12].mxu0 }
 0x59e   : > { %v897_v43 = vadd.f32 %v896_v42, %v857_v41  ;;  %v898_v44 = vpop.f32.mrb[13].mxu0 }
 0x59f   : > { %v899_v45 = vadd.f32 %v898_v44, %v857_v41  ;;  %v900_v46 = vpop.f32.mrb[14].mxu0 }
 0x5a0   : > { %v901_v47 = vpop.f32.mrb[15].mxu0 }
 0x5a1   : > { %v905_v48 = vcombine.low %v897_v43, %v899_v45 }
 0x5a3   : > { %907 = vst [vmem:[%s352_s30] sm:$0xff] %v905_v48 }
 0x5a4 PF: > { %p19_p8 = scmp.ge.s32.totalorder %s1267_s14, 6   ;;  %s1604_s30 = smov %s1181_s10 }
 0x5a5   : > { %s1605_s10 = smov %s1185_s11  ;;  %s1606_s11 = smov %s1277_s17 }
 0x5a6   : > { %s1607_s12 = smov %s1267_s14  ;;  %21 = sbr.rel (!%p19_p8) target bundleno = 3 (0x3), region = 96 }
 0x5ad   :  { %929 = vsyncpa [#allocation3], 1 }
 0x5ae   :  { %931 = vsyncpa [#allocation3 + $0x1], 1 }

</bundles_post_ra>
